<compile_context>
chip_gen: v5e
topology: v5e:2x2
jax: 0.10.0
libtpu: 0.0.40
codegen_flags: <defaults>
</compile_context>

<pallas_src>
import math

import jax
import jax.numpy as jnp
import numpy as np
from jax.experimental import pallas as pl
from jax.experimental.pallas import tpu as pltpu


# ----------------------------- Pallas kernel -------------------------------

def _bnn_fused_kernel(*refs):
    """refs = (x_ref, w_ref_0, b_ref_0, ..., w_ref_{L-1}, b_ref_{L-1}, o_ref).

    All refs are full-array VMEM blocks.  The sample axis is already fused
    into the output-feature (lane) dimension of every weight/bias, so the
    whole multi-sample MLP is a chain of lane-dense matmuls on the MXU with
    the bias add / relu done on the VPU in f32.
    """
    x_ref = refs[0]
    o_ref = refs[-1]
    wb_refs = refs[1:-1]
    n_layers = len(wb_refs) // 2

    h = x_ref[...]
    for layer in range(n_layers):
        w = wb_refs[2 * layer][...]
        b = wb_refs[2 * layer + 1][...]      # (1, d_out) -> broadcasts over batch
        h = jnp.dot(h, w, preferred_element_type=jnp.float32) + b
        if layer < n_layers - 1:
            h = jnp.maximum(h, 0.0)          # relu on all but the last layer
    o_ref[...] = h.astype(o_ref.dtype)


def _fuse_sample_weights(ws, bs):
    """Fuse the n_samples axis into the output-feature (lane) dimension.

    ws[l]: (S, d_in, d_out), bs[l]: (S, d_out)
      layer 0   -> (d_in, S*d_out)     (per-sample weights concatenated on N)
      layer l>0 -> (S*d_in, S*d_out)   (block-diagonal: sample s's activations
                                        only see sample s's weights)
      bias      -> (1, S*d_out)
    The zero off-diagonal blocks contribute exact zeros to the f32
    accumulator, so results match the per-sample reference.
    """
    S = ws[0].shape[0]
    fused_w, fused_b = [], []
    for l, (w, b) in enumerate(zip(ws, bs)):
        _, d_in, d_out = w.shape
        if l == 0:
            wf = jnp.transpose(w, (1, 0, 2)).reshape(d_in, S * d_out)
        else:
            eye = jnp.eye(S, dtype=w.dtype)
            blk = w[:, :, None, :] * eye[:, None, :, None]   # (S, d_in, S, d_out)
            wf = blk.reshape(S * d_in, S * d_out)
        fused_w.append(wf)
        fused_b.append(b.reshape(1, S * d_out))
    return fused_w, fused_b


def bnn_forward_pallas(x, ws, bs):
    """x: (batch, inp); ws[l]: (n_samples, d_in, d_out); bs[l]: (n_samples, d_out).
    Returns (batch, n_samples, outp_dim) == torch.stack(outputs, dim=1)."""
    batch = x.shape[0]
    n_samples = ws[0].shape[0]
    outp_dim = ws[-1].shape[-1]

    # TODO(synk): at realistic hidden sizes, cast matmul operands to bf16 and
    # move the reparameterization (mu + softplus(rho) * eps, or in-kernel PRNG)
    # inside the kernel to cut HBM traffic; irrelevant at these toy dims.
    fws, fbs = _fuse_sample_weights(ws, bs)

    args = [x]
    for w, b in zip(fws, fbs):
        args.append(w)
        args.append(b)

    out_flat = pl.pallas_call(
        _bnn_fused_kernel,
        out_shape=jax.ShapeDtypeStruct((batch, n_samples * outp_dim), jnp.float32),
        grid=(1,),  # single invocation: everything fits VMEM, no per-sample grid steps
        in_specs=[pl.BlockSpec(a.shape, lambda i: (0, 0)) for a in args],
        out_specs=pl.BlockSpec((batch, n_samples * outp_dim), lambda i: (0, 0)),
        compiler_params=pltpu.CompilerParams(dimension_semantics=("arbitrary",)),
    )(*args)

    # Free, layout-preserving reshape (row-major split of the last axis),
    # matching torch.stack(outputs, dim=1).  No transpose, no HBM round trip.
    return out_flat.reshape(batch, n_samples, outp_dim)


# --------------------------- parameter setup (glue) -------------------------

def _std_to_log(std):
    return math.log(math.exp(std) - 1.0)


def init_bnn_params(key, inp_dim, hidden_dims, outp_dim, std_prior):
    """Deterministic init mirroring BNNLayer.__init__:
       W_mu ~ N(0, 0.2), W_rho = std_to_log(prior_std), b_mu = 0,
       b_rho = std_to_log(prior_std)."""
    dims = [inp_dim] + list(hidden_dims) + [outp_dim]
    params = []
    for i in range(len(dims) - 1):
        key, sub = jax.random.split(key)
        d_in, d_out = dims[i], dims[i + 1]
        W_mu = 0.2 * jax.random.normal(sub, (d_in, d_out), dtype=jnp.float32)
        W_rho = jnp.full((d_in, d_out), _std_to_log(std_prior), jnp.float32)
        b_mu = jnp.zeros((d_out,), jnp.float32)
        b_rho = jnp.full((d_out,), _std_to_log(std_prior), jnp.float32)
        params.append((W_mu, W_rho, b_mu, b_rho))
    return params


def sample_weights(key, params, n_samples):
    """Reparameterization: W = W_mu + softplus(W_rho) * eps (one draw per
    Monte-Carlo sample).  Stable softplus via jax.nn.softplus."""
    ws, bs = [], []
    for (W_mu, W_rho, b_mu, b_rho) in params:
        key, kw, kb = jax.random.split(key, 3)
        eps_w = jax.random.normal(kw, (n_samples,) + W_mu.shape, jnp.float32)
        eps_b = jax.random.normal(kb, (n_samples,) + b_mu.shape, jnp.float32)
        ws.append(W_mu[None] + jax.nn.softplus(W_rho)[None] * eps_w)
        bs.append(b_mu[None] + jax.nn.softplus(b_rho)[None] * eps_b)
    return ws, bs


def bnn_forward_reference(x, ws, bs):
    outs = []
    for s in range(ws[0].shape[0]):
        h = x
        for li in range(len(ws) - 1):
            h = jnp.maximum(h @ ws[li][s] + bs[li][s], 0.0)
        outs.append(h @ ws[-1][s] + bs[-1][s])
    return jnp.stack(outs, axis=1)


# ---------------------------------- main ------------------------------------

if __name__ == "__main__":
    inp_dim, hidden_dims, outp_dim = 16, (32, 32), 8
    std_prior = 0.5
    n_samples = 4          # S * hidden = 128 -> full lane width in the fused matmuls
    batch = 8              # multiple of 8 sublanes (f32)

    key = jax.random.PRNGKey(0)
    k_x, k_p, k_s = jax.random.split(key, 3)

    x = jax.random.normal(k_x, (batch, inp_dim), dtype=jnp.float32)
    params = init_bnn_params(k_p, inp_dim, hidden_dims, outp_dim, std_prior)
    ws, bs = sample_weights(k_s, params, n_samples)

    out = bnn_forward_pallas(x, ws, bs)
    out = jax.block_until_ready(out)

    ref = bnn_forward_reference(x, ws, bs)
    assert out.shape == (batch, n_samples, outp_dim), out.shape
    np.testing.assert_allclose(np.asarray(out), np.asarray(ref),
                               rtol=1e-3, atol=1e-3)

    # TODO(synk): infer=True path (W_mu/b_mu directly, single pass), optional
    # BatchNorm1d (bn_first), and the KL / neg_log_prob_normal losses are
    # training-side glue, not kernel hot path.
    print("KERNEL_OK")
</pallas_src>

<mosaic_0001>
module attributes {stable_mosaic.version = 11 : i64} {
  func.func @_bnn_fused_kernel(%arg0: i32, %arg1: memref<8x16xf32, #tpu.memory_space<vmem>>, %arg2: memref<16x128xf32, #tpu.memory_space<vmem>>, %arg3: memref<1x128xf32, #tpu.memory_space<vmem>>, %arg4: memref<128x128xf32, #tpu.memory_space<vmem>>, %arg5: memref<1x128xf32, #tpu.memory_space<vmem>>, %arg6: memref<128x32xf32, #tpu.memory_space<vmem>>, %arg7: memref<1x32xf32, #tpu.memory_space<vmem>>, %arg8: memref<8x32xf32, #tpu.memory_space<vmem>>) attributes {dimension_semantics = [#tpu.dimension_semantics<arbitrary>], iteration_bounds = array<i64: 1>, scalar_prefetch = 0 : i64, scratch_operands = 0 : i64, tpu.core_type = #tpu.core_type<tc>, window_params = [{pipeline_mode = #tpu.pipeline_mode<synchronous>, transform_indices = @transform_0, window_bounds = array<i64: 8, 16>}, {pipeline_mode = #tpu.pipeline_mode<synchronous>, transform_indices = @transform_1, window_bounds = array<i64: 16, 128>}, {pipeline_mode = #tpu.pipeline_mode<synchronous>, transform_indices = @transform_2, window_bounds = array<i64: 1, 128>}, {pipeline_mode = #tpu.pipeline_mode<synchronous>, transform_indices = @transform_3, window_bounds = array<i64: 128, 128>}, {pipeline_mode = #tpu.pipeline_mode<synchronous>, transform_indices = @transform_4, window_bounds = array<i64: 1, 128>}, {pipeline_mode = #tpu.pipeline_mode<synchronous>, transform_indices = @transform_5, window_bounds = array<i64: 128, 32>}, {pipeline_mode = #tpu.pipeline_mode<synchronous>, transform_indices = @transform_6, window_bounds = array<i64: 1, 32>}, {pipeline_mode = #tpu.pipeline_mode<synchronous>, transform_indices = @transform_7, window_bounds = array<i64: 8, 32>}]} {
    %c0 = arith.constant 0 : index
    %c0_0 = arith.constant 0 : index
    %0 = vector.load %arg1[%c0, %c0_0] : memref<8x16xf32, #tpu.memory_space<vmem>>, vector<8x16xf32>
    %c0_1 = arith.constant 0 : index
    %c0_2 = arith.constant 0 : index
    %1 = vector.load %arg2[%c0_1, %c0_2] : memref<16x128xf32, #tpu.memory_space<vmem>>, vector<16x128xf32>
    %c0_3 = arith.constant 0 : index
    %c0_4 = arith.constant 0 : index
    %2 = vector.load %arg3[%c0_3, %c0_4] : memref<1x128xf32, #tpu.memory_space<vmem>>, vector<1x128xf32>
    %cst = arith.constant dense<0.000000e+00> : vector<8x128xf32>
    %3 = tpu.matmul %0, %1, %cst {dimension_numbers = #tpu.dot_dimension_numbers<[1], [0], [0], [1], [0, 0, 1, 1], [], []>} : vector<8x16xf32>, vector<16x128xf32>, vector<8x128xf32> -> vector<8x128xf32>
    %4 = vector.broadcast %2 : vector<1x128xf32> to vector<8x128xf32>
    %5 = arith.addf %3, %4 : vector<8x128xf32>
    %cst_5 = arith.constant 0.000000e+00 : f32
    %6 = vector.broadcast %cst_5 : f32 to vector<8x128xf32>
    %7 = arith.maximumf %5, %6 : vector<8x128xf32>
    %c0_6 = arith.constant 0 : index
    %c0_7 = arith.constant 0 : index
    %8 = vector.load %arg4[%c0_6, %c0_7] : memref<128x128xf32, #tpu.memory_space<vmem>>, vector<128x128xf32>
    %c0_8 = arith.constant 0 : index
    %c0_9 = arith.constant 0 : index
    %9 = vector.load %arg5[%c0_8, %c0_9] : memref<1x128xf32, #tpu.memory_space<vmem>>, vector<1x128xf32>
    %cst_10 = arith.constant dense<0.000000e+00> : vector<8x128xf32>
    %10 = tpu.matmul %7, %8, %cst_10 {dimension_numbers = #tpu.dot_dimension_numbers<[1], [0], [0], [1], [0, 0, 1, 1], [], []>} : vector<8x128xf32>, vector<128x128xf32>, vector<8x128xf32> -> vector<8x128xf32>
    %11 = vector.broadcast %9 : vector<1x128xf32> to vector<8x128xf32>
    %12 = arith.addf %10, %11 : vector<8x128xf32>
    %cst_11 = arith.constant 0.000000e+00 : f32
    %13 = vector.broadcast %cst_11 : f32 to vector<8x128xf32>
    %14 = arith.maximumf %12, %13 : vector<8x128xf32>
    %c0_12 = arith.constant 0 : index
    %c0_13 = arith.constant 0 : index
    %15 = vector.load %arg6[%c0_12, %c0_13] : memref<128x32xf32, #tpu.memory_space<vmem>>, vector<128x32xf32>
    %c0_14 = arith.constant 0 : index
    %c0_15 = arith.constant 0 : index
    %16 = vector.load %arg7[%c0_14, %c0_15] : memref<1x32xf32, #tpu.memory_space<vmem>>, vector<1x32xf32>
    %cst_16 = arith.constant dense<0.000000e+00> : vector<8x32xf32>
    %17 = tpu.matmul %14, %15, %cst_16 {dimension_numbers = #tpu.dot_dimension_numbers<[1], [0], [0], [1], [0, 0, 1, 1], [], []>} : vector<8x128xf32>, vector<128x32xf32>, vector<8x32xf32> -> vector<8x32xf32>
    %18 = vector.broadcast %16 : vector<1x32xf32> to vector<8x32xf32>
    %19 = arith.addf %17, %18 : vector<8x32xf32>
    %c0_17 = arith.constant 0 : index
    %c0_18 = arith.constant 0 : index
    %20 = vector.load %arg8[%c0_17, %c0_18] : memref<8x32xf32, #tpu.memory_space<vmem>>, vector<8x32xf32>
    tpu.vector_store %arg8[%c0_17, %c0_18], %19 {strides = array<i32>} : memref<8x32xf32, #tpu.memory_space<vmem>>, vector<8x32xf32>,
    return
  }
  func.func @transform_0(%arg0: i32) -> (i32, i32) {
    %c0_i32 = arith.constant 0 : i32
    %c0_i32_0 = arith.constant 0 : i32
    %c0_i32_1 = arith.constant 0 : i32
    return %c0_i32, %c0_i32_0 : i32, i32
  }
  func.func @transform_1(%arg0: i32) -> (i32, i32) {
    %c0_i32 = arith.constant 0 : i32
    %c0_i32_0 = arith.constant 0 : i32
    %c0_i32_1 = arith.constant 0 : i32
    return %c0_i32, %c0_i32_0 : i32, i32
  }
  func.func @transform_2(%arg0: i32) -> (i32, i32) {
    %c0_i32 = arith.constant 0 : i32
    %c0_i32_0 = arith.constant 0 : i32
    %c0_i32_1 = arith.constant 0 : i32
    return %c0_i32, %c0_i32_0 : i32, i32
  }
  func.func @transform_3(%arg0: i32) -> (i32, i32) {
    %c0_i32 = arith.constant 0 : i32
    %c0_i32_0 = arith.constant 0 : i32
    %c0_i32_1 = arith.constant 0 : i32
    return %c0_i32, %c0_i32_0 : i32, i32
  }
  func.func @transform_4(%arg0: i32) -> (i32, i32) {
    %c0_i32 = arith.constant 0 : i32
    %c0_i32_0 = arith.constant 0 : i32
    %c0_i32_1 = arith.constant 0 : i32
    return %c0_i32, %c0_i32_0 : i32, i32
  }
  func.func @transform_5(%arg0: i32) -> (i32, i32) {
    %c0_i32 = arith.constant 0 : i32
    %c0_i32_0 = arith.constant 0 : i32
    %c0_i32_1 = arith.constant 0 : i32
    return %c0_i32, %c0_i32_0 : i32, i32
  }
  func.func @transform_6(%arg0: i32) -> (i32, i32) {
    %c0_i32 = arith.constant 0 : i32
    %c0_i32_0 = arith.constant 0 : i32
    %c0_i32_1 = arith.constant 0 : i32
    return %c0_i32, %c0_i32_0 : i32, i32
  }
  func.func @transform_7(%arg0: i32) -> (i32, i32) {
    %c0_i32 = arith.constant 0 : i32
    %c0_i32_0 = arith.constant 0 : i32
    %c0_i32_1 = arith.constant 0 : i32
    return %c0_i32, %c0_i32_0 : i32, i32
  }
}

</mosaic_0001>

<bundles_post_ra>
// kernel: tpu_custom_call.1
= control target key start
LH: loop header
LB: loop body
LE: loop exit
PB: predicated region body
PF: predicated region fallthrough
CT: control target
= control target key end

     0   :  { %vm34_vm0 = vcmask 130048   ;;  %s347_s0 = inlined_call_operand.vmem [shape: f32[8,16], index: 0, kind: input, shape index: {}]   ;;  %s348_s1 = inlined_call_operand.vmem [shape: f32[16,128], index: 1, kind: input, shape index: {}]   ;;  %s349_s2 = inlined_call_operand.vmem [shape: f32[1,128], index: 2, kind: input, shape index: {}]   ;;  %s350_s3 = inlined_call_operand.vmem [shape: f32[128,128], index: 3, kind: input, shape index: {}]   ;;  %s351_s4 = inlined_call_operand.vmem [shape: f32[1,128], index: 4, kind: input, shape index: {}]   ;;  %s352_s5 = inlined_call_operand.vmem [shape: f32[128,32], index: 5, kind: input, shape index: {}]   ;;  %s353_s6 = inlined_call_operand.vmem [shape: f32[1,32], index: 6, kind: input, shape index: {}]   ;;  %s354_s7 = inlined_call_operand.hbm [shape: f32[8,32], index: 7, kind: output, shape index: {}]  }
   0x1   :  { %v29_v0 = vld [vmem:[%s348_s1 + $0x8] sm:$0xff]  ;;  %v28_v1 = vld [vmem:[%s348_s1] sm:$0xff]  ;;  %v74_v3 = vld [vmem:[%s350_s3 + $0x78] sm:$0xff] }
   0x2   :  { %52 = vmatpush.msra.mxu0 %v29_v0  ;;  %v27_v2 = vld [vmem:[%s347_s0] sm:$0xff]  ;;  %v73_v4 = vld [vmem:[%s350_s3 + $0x70] sm:$0xff]  ;;  %79 = vmatpush.msra.mxu1 %v74_v3  ;;  %v72_v5 = vld [vmem:[%s350_s3 + $0x68] sm:$0xff] }
   0x3   :  { %v71_v6 = vld [vmem:[%s350_s3 + $0x60] sm:$0xff] }
   0x4   :  { %53 = vmatpush.msra.mxu0 %v28_v1  ;;  %80 = vmatpush.msra.mxu1 %v73_v4 }
   0x5   :  { %158 = vmatmul.msk.f32.vlgmr.msra.gmra.mxu0 %vm34_vm0, %v27_v2 }
   0x6   :  { %81 = vmatpush.msra.mxu1 %v72_v5 }
   0x7   :  { %12 = vsyncpa [#allocation3], 0  ;;  %v70_v7 = vld [vmem:[%s350_s3 + $0x58] sm:$0xff]  ;;  %v69_v8 = vld [vmem:[%s350_s3 + $0x50] sm:$0xff]  ;;  %s189_s22 = smov [#allocation2]   ;;  %s149_s26 = sshll.u32 %s354_s7, 4  ;;  %s150_s26 = int_to_ptr.hbm [resolvable:$true] %s149_s26 }
   0x8   :  { %82 = vmatpush.msra.mxu1 %v71_v6  ;;  %v68_v9 = vld [vmem:[%s350_s3 + $0x48] sm:$0xff]  ;;  %v67_v10 = vld [vmem:[%s350_s3 + $0x40] sm:$0xff]  ;;  %v66_v11 = vld [vmem:[%s350_s3 + $0x38] sm:$0xff]  ;;  %s147_s23 = sshll.u32 %s189_s22, 4  ;;  %vm140_vm1 = vcmask 261120   ;;  %s148_s23 = int_to_ptr.vmem [resolvable:$true] %s147_s23 }
   0x9   :  { %v65_v12 = vld [vmem:[%s350_s3 + $0x30] sm:$0xff]  ;;  %v64_v13 = vld [vmem:[%s350_s3 + $0x28] sm:$0xff]  ;;  %v63_v14 = vld [vmem:[%s350_s3 + $0x20] sm:$0xff] }
   0xa   :  { %83 = vmatpush.msra.mxu1 %v70_v7  ;;  %v62_v15 = vld [vmem:[%s350_s3 + $0x18] sm:$0xff]  ;;  %v61_v16 = vld [vmem:[%s350_s3 + $0x10] sm:$0xff]  ;;  %v60_v17 = vld [vmem:[%s350_s3 + $0x8] sm:$0xff] }
   0xb   :  { %v59_v18 = vld [vmem:[%s350_s3] sm:$0xff]  ;;  %v115_v19 = vld [vmem:[%s352_s5 + $0x78] sm:$0xff]  ;;  %v114_v20 = vld [vmem:[%s352_s5 + $0x70] sm:$0xff] }
   0xc   :  { %84 = vmatpush.msra.mxu1 %v69_v8  ;;  %120 = vmatpush.msra.mxu2 %v115_v19  ;;  %v113_v21 = vld [vmem:[%s352_s5 + $0x68] sm:$0xff]  ;;  %v112_v22 = vld [vmem:[%s352_s5 + $0x60] sm:$0xff]  ;;  %v111_v23 = vld [vmem:[%s352_s5 + $0x58] sm:$0xff] }
   0xd   :  { %v110_v24 = vld [vmem:[%s352_s5 + $0x50] sm:$0xff]  ;;  %v109_v25 = vld [vmem:[%s352_s5 + $0x48] sm:$0xff]  ;;  %v108_v26 = vld [vmem:[%s352_s5 + $0x40] sm:$0xff] }
   0xe   :  { %85 = vmatpush.msra.mxu1 %v68_v9  ;;  %121 = vmatpush.msra.mxu2 %v114_v20  ;;  %v107_v27 = vld [vmem:[%s352_s5 + $0x38] sm:$0xff]  ;;  %v106_v28 = vld [vmem:[%s352_s5 + $0x30] sm:$0xff]  ;;  %v105_v29 = vld [vmem:[%s352_s5 + $0x28] sm:$0xff] }
   0xf   :  { %v104_v30 = vld [vmem:[%s352_s5 + $0x20] sm:$0xff]  ;;  %v103_v31 = vld [vmem:[%s352_s5 + $0x18] sm:$0xff]  ;;  %v102_v36 = vld [vmem:[%s352_s5 + $0x10] sm:$0xff] }
  0x10   :  { %86 = vmatpush.msra.mxu1 %v67_v10  ;;  %122 = vmatpush.msra.mxu2 %v113_v21  ;;  %v160_v32 = vld [vmem:[%s349_s2] ss:$0 sm:$0xff]  ;;  %v101_v37 = vld [vmem:[%s352_s5 + $0x8] sm:$0xff] }
  0x11   :  { %v100_v38 = vld [vmem:[%s352_s5] sm:$0xff] }
  0x12   :  { %87 = vmatpush.msra.mxu1 %v66_v11  ;;  %123 = vmatpush.msra.mxu2 %v112_v22  ;;  %v161_v39 = vld [vmem:[%s351_s4] ss:$0 sm:$0xff] }
  0x13   :  { %v162_v43 = vld [vmem:[%s353_s6] ss:$0 sm:$0xff] }
  0x14   :  { %88 = vmatpush.msra.mxu1 %v65_v12  ;;  %124 = vmatpush.msra.mxu2 %v111_v23 }
  0x16   :  { %89 = vmatpush.msra.mxu1 %v64_v13  ;;  %125 = vmatpush.msra.mxu2 %v110_v24 }
  0x18   :  { %90 = vmatpush.msra.mxu1 %v63_v14  ;;  %126 = vmatpush.msra.mxu2 %v109_v25 }
  0x1a   :  { %91 = vmatpush.msra.mxu1 %v62_v15  ;;  %127 = vmatpush.msra.mxu2 %v108_v26 }
  0x1c   :  { %92 = vmatpush.msra.mxu1 %v61_v16  ;;  %128 = vmatpush.msra.mxu2 %v107_v27 }
  0x1e   :  { %93 = vmatpush.msra.mxu1 %v60_v17  ;;  %129 = vmatpush.msra.mxu2 %v106_v28 }
  0x20   :  { %94 = vmatpush.msra.mxu1 %v59_v18  ;;  %130 = vmatpush.msra.mxu2 %v105_v29 }
  0x22   :  { %131 = vmatpush.msra.mxu2 %v104_v30 }
  0x24   :  { %132 = vmatpush.msra.mxu2 %v103_v31 }
  0x26   :  { %133 = vmatpush.msra.mxu2 %v102_v36 }
  0x28   :  { %134 = vmatpush.msra.mxu2 %v101_v37 }
  0x2a   :  { %135 = vmatpush.msra.mxu2 %v100_v38 }
  0x82   :  { %v55_v33 = vpop.f32.mrf.mxu0 }
  0x83   :  { %v56_v34 = vadd.f32 %v160_v32, %v55_v33 }
  0x85   :  { %v58_v35 = vmax.f32 %v56_v34, 0.0 }
  0x87   :  { %95 = vmatmul.f32.vlgmr.msra.gmra.mxu1 %v58_v35 }
 0x104   :  { %v96_v40 = vpop.f32.mrf.mxu1 }
 0x105   :  { %v97_v41 = vadd.f32 %v161_v39, %v96_v40 }
 0x107   :  { %v99_v42 = vmax.f32 %v97_v41, 0.0 }
 0x109   :  { %136 = vmatmul.f32.vlgmr.msra.gmra.mxu2 %v99_v42 }
 0x18c   :  { %v137_v44 = vpop.f32.mrf.mxu2 }
 0x18d   :  { %v138_v45 = vadd.f32 %v162_v43, %v137_v44 }
 0x18f   :  { %141 = vst.msk [vmem:[#allocation2] sm:$0xff] %vm140_vm1, %v138_v45 }
 0x190   :  { %152 = dma.vmem_to_hbm [thread:$0]  %s148_s23, 128, %s150_s26, [#allocation3]  }
 0x191   :  { %187 = dma.done.wait [#allocation3], 128  }
 0x192   :  { %188 = vsyncadd [#allocation3], 4294967168 }
 0x193   :  { %157 = vsyncpa [#allocation3], 1 }

</bundles_post_ra>
